<compile_context>
chip_gen: v6e
topology: v6e:2x2x1
jax: 0.10.0
libtpu: 0.0.40
codegen_flags: <defaults>
</compile_context>

<pallas_src>
import functools
import math

import numpy as np
import jax
import jax.numpy as jnp
from jax.experimental import pallas as pl
from jax.experimental.pallas import tpu as pltpu


_LANE = 128
_FUSED_MAX_LC = 2048        # use the fused (LC, LC) operator below this


# --------------------------------------------------------------------------
# small helpers
# --------------------------------------------------------------------------
def _round_up(x, m):
    return ((x + m - 1) // m) * m


def _vmem_limit_bytes():
    """~3/4 of physical VMEM: ~48 MiB on v7x (64 MiB), ~96 MiB on v5e/v6e."""
    cap = 64 * 1024 * 1024
    try:
        info = pltpu.get_tpu_info()
        cap = int(getattr(info, "vmem_capacity_bytes", cap)) or cap
    except Exception:
        pass
    return max(32 * 1024 * 1024, min((cap * 3) // 4, 100 * 1024 * 1024))


def _host_split_bf16(a):
    """Host-side f32 -> (hi, lo) bf16 pair (done ONCE, outside the kernel)."""
    a = jnp.asarray(a, jnp.float32)
    hi = a.astype(jnp.bfloat16)
    lo = (a - hi.astype(jnp.float32)).astype(jnp.bfloat16)
    return hi, lo


def _split_bf16(a):
    """In-kernel split of the (non-constant) data operand."""
    hi = a.astype(jnp.bfloat16)
    lo = (a - hi.astype(jnp.float32)).astype(jnp.bfloat16)
    return hi, lo


def _mm(d_hi, d_lo, o_hi, o_lo):
    """~f32-accurate matmul from pre-split bf16 hi/lo pairs: 3 single-pass MXU
    products with f32 accumulation (== lax.Precision.HIGH; lo*lo dropped)."""
    dot = lambda a, b: jnp.dot(a, b, preferred_element_type=jnp.float32)
    return dot(d_hi, o_hi) + dot(d_lo, o_hi) + dot(d_hi, o_lo)


def _pick_tb(B, target):
    """Batch elements per grid step; prefer a divisor of B (no pad copy)."""
    target = int(max(1, min(target, B)))
    if target >= B:
        return B, B
    best = 1
    for d in range(1, target + 1):
        if B % d == 0:
            best = d
    if 2 * best >= target:
        return best, B
    return target, _round_up(B, target)


def _pick_tb_aligned(B, target, align):
    """Same, but tb must be `align`-aligned (it is a sublane dim) or == B."""
    target = int(max(1, min(target, B)))
    if target >= B:
        return B, B
    best = 0
    d = align
    while d <= target:
        if B % d == 0:
            best = d
        d += align
    if best and 2 * best >= target:
        return best, B
    tb = max(align, (target // align) * align)
    return tb, _round_up(B, tb)


# --------------------------------------------------------------------------
# fused path: whole FourierMixer folded into one (LC, LC) operator
# --------------------------------------------------------------------------
def _fused_kernel(x_ref, t_hi_ref, t_lo_ref, o_ref):
    x_hi, x_lo = _split_bf16(x_ref[...])
    o_ref[...] = _mm(x_hi, x_lo, t_hi_ref[...], t_lo_ref[...]).astype(o_ref.dtype)


def _fused_operator(L, C, w):
    """x -> irfft2(rfft2(x, ortho) * w, ortho) is real-linear in x, so build
    the (LC, LC) matrix T (out_flat = x_flat @ T) by pushing the identity
    basis through the reference transform (host numpy, float64)."""
    LC = L * C
    eye = np.eye(LC, dtype=np.float64).reshape(LC, L, C)
    X = np.fft.rfft2(eye, axes=(1, 2), norm="ortho")
    wc = np.asarray(w[..., 0], np.float64) + 1j * np.asarray(w[..., 1], np.float64)
    out = np.fft.irfft2(X * wc[None], s=(L, C), axes=(1, 2), norm="ortho")
    return out.reshape(LC, LC)


def _fourier_mixer_fused(x, complex_weight, vmem_limit):
    B, L, C = x.shape
    LC = L * C
    LCp = _round_up(LC, _LANE)                    # lane-dense in AND out

    t = np.zeros((LCp, LCp), np.float64)
    t[:LC, :LC] = _fused_operator(L, C, np.asarray(complex_weight))
    t_hi, t_lo = _host_split_bf16(t)

    # live bytes / batch element (dbl-buffered io + bf16 copies + f32 result)
    per_elem = 32 * LCp
    const_bytes = 8 * LCp * LCp                   # hi+lo bf16, dbl-buffered
    tb_target = (vmem_limit // 2 - const_bytes) // max(per_elem, 1)
    tb, Bp = _pick_tb_aligned(B, tb_target, 8)

    xf = x.astype(jnp.float32).reshape(B, LC)
    if LCp != LC:                                 # free when LC % 128 == 0
        xf = jnp.pad(xf, ((0, 0), (0, LCp - LC)))
    if Bp != B:
        xf = jnp.pad(xf, ((0, Bp - B), (0, 0)))

    def in_specs(buffered):
        cs = {"pipeline_mode": pl.Buffered(1)} if buffered else {}
        return [pl.BlockSpec((tb, LCp), lambda i: (i, 0)),
                pl.BlockSpec((LCp, LCp), lambda i: (0, 0), **cs),
                pl.BlockSpec((LCp, LCp), lambda i: (0, 0), **cs)]

    out_spec = pl.BlockSpec((tb, LCp), lambda i: (i, 0))

    def build(buffered):
        return pl.pallas_call(
            _fused_kernel,
            out_shape=jax.ShapeDtypeStruct((Bp, LCp), jnp.float32),
            grid_spec=pltpu.PrefetchScalarGridSpec(
                num_scalar_prefetch=0, grid=(Bp // tb,),
                in_specs=in_specs(buffered), out_specs=out_spec),
            compiler_params=pltpu.CompilerParams(
                dimension_semantics=("parallel",),   # megacore / v7x dual-TC
                vmem_limit_bytes=vmem_limit),
        )(xf, t_hi, t_lo)

    try:                                          # single-buffered constants,
        out = build(True)                         # fall back if unsupported
    except Exception:
        out = build(False)
    return out[:B, :LC].reshape(B, L, C)


# --------------------------------------------------------------------------
# spectral path: rDFT / DFT operator matmuls (all wide 2-D MXU products)
# --------------------------------------------------------------------------
def _spectral_kernel(x_ref, r_hi, r_lo, fre_hi, fre_lo, fim_hi, fim_lo,
                     c_hi, c_lo, wre_ref, wim_ref, o_ref, *, tb, L, C, Mp):
    LT = tb * L
    Mp2 = 2 * Mp

    # rfft along C: one wide matmul against [Re | Im] rDFT operator (C, 2Mp)
    x_hi, x_lo = _split_bf16(x_ref[...].reshape(LT, C))
    ab = _mm(x_hi, x_lo, r_hi[...], r_lo[...])            # (LT, 2Mp) = [a | b]

    # put L on the lane/contraction axis -> wide (tb*2Mp, L) 2-D matmuls
    abT = jnp.swapaxes(ab.reshape(tb, L, Mp2), 1, 2).reshape(tb * Mp2, L)
    a_hi, a_lo = _split_bf16(abT)

    # fft along L: F = (cos - i sin)/sqrt(L) is symmetric, so right-multiply.
    p = _mm(a_hi, a_lo, fre_hi[...], fre_lo[...]).reshape(tb, Mp2, L)
    q = _mm(a_hi, a_lo, fim_hi[...], fim_lo[...]).reshape(tb, Mp2, L)
    xreT = p[:, :Mp] - q[:, Mp:]                          # Re(X)^T  (tb,Mp,L)
    ximT = p[:, Mp:] + q[:, :Mp]                          # Im(X)^T

    # learned complex spectral weight (transposed layout, implicit batch bcast)
    wre = wre_ref[...]
    wim = wim_ref[...]
    yreT = xreT * wre - ximT * wim
    yimT = xreT * wim + ximT * wre

    # ifft along L: F^-1 = conj(F) -> reuse fre / fim with flipped signs
    yT = jnp.concatenate([yreT, yimT], axis=1).reshape(tb * Mp2, L)
    y_hi, y_lo = _split_bf16(yT)
    pg = _mm(y_hi, y_lo, fre_hi[...], fre_lo[...]).reshape(tb, Mp2, L)
    qg = _mm(y_hi, y_lo, fim_hi[...], fim_lo[...]).reshape(tb, Mp2, L)
    zreT = pg[:, :Mp] + qg[:, Mp:]
    zimT = pg[:, Mp:] - qg[:, :Mp]

    # irfft along C: hermitian fold baked into [cc ; -cs]  (2Mp, C)
    zT = jnp.concatenate([zreT, zimT], axis=1)            # (tb, 2Mp, L)
    z2 = jnp.swapaxes(zT, 1, 2).reshape(LT, Mp2)
    z_hi, z_lo = _split_bf16(z2)
    out = _mm(z_hi, z_lo, c_hi[...], c_lo[...])           # (LT, C)
    o_ref[...] = out.reshape(tb, L, C).astype(o_ref.dtype)


@functools.lru_cache(maxsize=8)
def _dft_operators(L, C, Mp):
    """Ortho-normalized real DFT operators, zero-padded to the lane-aligned
    half-spectrum width Mp and pre-split into bf16 hi/lo pairs (host, once)."""
    M = C // 2 + 1
    ang_l = 2.0 * np.pi * np.outer(np.arange(L), np.arange(L)) / L
    s_l = 1.0 / math.sqrt(L)
    fre = np.cos(ang_l) * s_l                              # symmetric (L, L)
    fim = -np.sin(ang_l) * s_l                             # symmetric (L, L)

    ang_c = 2.0 * np.pi * np.outer(np.arange(C), np.arange(M)) / C
    s_c = 1.0 / math.sqrt(C)
    rcat = np.zeros((C, 2 * Mp))
    rcat[:, :M] = np.cos(ang_c) * s_c
    rcat[:, Mp:Mp + M] = -np.sin(ang_c) * s_c

    alpha = np.full((M,), 2.0)
    alpha[0] = 1.0
    if C % 2 == 0:
        alpha[-1] = 1.0                                    # Nyquist (even C)
    ccat = np.zeros((2 * Mp, C))
    ccat[:M] = alpha[:, None] * np.cos(ang_c.T) * s_c
    ccat[Mp:Mp + M] = -(alpha[:, None] * np.sin(ang_c.T) * s_c)

    return tuple(_host_split_bf16(a) for a in (rcat, fre, fim, ccat))


def _fourier_mixer_spectral(x, complex_weight, vmem_limit):
    B, L, C = x.shape
    M = C // 2 + 1
    Mp = _round_up(M, _LANE)
    (r_hi, r_lo), (fre_hi, fre_lo), (fim_hi, fim_lo), (c_hi, c_lo) = \
        _dft_operators(L, C, Mp)

    # transposed, zero-padded spectral weight (Mp, L); padded rows are inert
    wreT = jnp.zeros((Mp, L), jnp.float32).at[:M].set(complex_weight[..., 0].T)
    wimT = jnp.zeros((Mp, L), jnp.float32).at[:M].set(complex_weight[..., 1].T)

    # VMEM accounting: io blocks (dbl-buffered), f32/bf16 intermediates per
    # element, plus the shared operator / weight blocks.
    per_elem = 16 * L * C + 64 * L * Mp
    const_bytes = 8 * (4 * C * Mp + 2 * L * L) + 16 * Mp * L
    tb_target = (vmem_limit // 3 - const_bytes) // max(per_elem, 1)
    tb, Bp = _pick_tb(B, tb_target)

    xf = x.astype(jnp.float32)
    if Bp != B:
        xf = jnp.pad(xf, ((0, Bp - B), (0, 0), (0, 0)))

    consts = (r_hi, r_lo, fre_hi, fre_lo, fim_hi, fim_lo, c_hi, c_lo, wreT, wimT)
    kernel = functools.partial(_spectral_kernel, tb=tb, L=L, C=C, Mp=Mp)

    def in_specs(buffered):
        cs = {"pipeline_mode": pl.Buffered(1)} if buffered else {}
        specs = [pl.BlockSpec((tb, L, C), lambda i: (i, 0, 0))]
        for a in consts:
            nd = a.ndim
            specs.append(pl.BlockSpec(a.shape, lambda i, _nd=nd: (0,) * _nd, **cs))
        return specs

    out_spec = pl.BlockSpec((tb, L, C), lambda i: (i, 0, 0))

    def build(buffered):
        return pl.pallas_call(
            kernel,
            out_shape=jax.ShapeDtypeStruct((Bp, L, C), jnp.float32),
            grid_spec=pltpu.PrefetchScalarGridSpec(
                num_scalar_prefetch=0, grid=(Bp // tb,),
                in_specs=in_specs(buffered), out_specs=out_spec),
            compiler_params=pltpu.CompilerParams(
                dimension_semantics=("parallel",),
                vmem_limit_bytes=vmem_limit),
        )(xf, *consts)

    try:
        out = build(True)
    except Exception:
        out = build(False)
    return out[:B]


# --------------------------------------------------------------------------
# public wrapper + pure-JAX reference
# --------------------------------------------------------------------------
def fourier_mixer(x, complex_weight):
    """x: (B, L, C) real; complex_weight: (L, C//2+1, 2) float32."""
    B, L, C = x.shape
    assert complex_weight.shape == (L, C // 2 + 1, 2)
    vmem_limit = _vmem_limit_bytes()
    LC = L * C
    LCp = _round_up(LC, _LANE)
    if LC <= _FUSED_MAX_LC and 8 * LCp * LCp <= vmem_limit // 2:
        return _fourier_mixer_fused(x, complex_weight, vmem_limit)
    return _fourier_mixer_spectral(x, complex_weight, vmem_limit)


def fourier_mixer_ref(x, complex_weight):
    """Pure-JAX reference mirroring the PyTorch forward."""
    B, L, C = x.shape
    X = jnp.fft.rfft2(x.astype(jnp.float32), axes=(1, 2), norm="ortho")
    w = complex_weight[..., 0] + 1j * complex_weight[..., 1]
    return jnp.fft.irfft2(X * w, s=(L, C), axes=(1, 2), norm="ortho")


if __name__ == "__main__":
    key = jax.random.PRNGKey(0)
    kx, kw, kx2, kw2 = jax.random.split(key, 4)

    # 1) shipped module config (seq_len=16, dim=8) -> fused single-matmul path
    B, L, C = 2, 16, 8
    x = jax.random.normal(kx, (B, L, C), dtype=jnp.float32)
    w = 0.02 * jax.random.normal(kw, (L, C // 2 + 1, 2), dtype=jnp.float32)
    out = jax.block_until_ready(fourier_mixer(x, w))
    ref = fourier_mixer_ref(x, w)
    np.testing.assert_allclose(np.asarray(out), np.asarray(ref),
                               rtol=1e-3, atol=1e-4)

    # 2) larger config -> general spectral (DFT-matmul) path
    B2, L2, C2 = 3, 32, 128
    x2 = jax.random.normal(kx2, (B2, L2, C2), dtype=jnp.float32)
    w2 = 0.02 * jax.random.normal(kw2, (L2, C2 // 2 + 1, 2), dtype=jnp.float32)
    out2 = jax.block_until_ready(fourier_mixer(x2, w2))
    ref2 = fourier_mixer_ref(x2, w2)
    np.testing.assert_allclose(np.asarray(out2), np.asarray(ref2),
                               rtol=1e-3, atol=1e-4)

    print("KERNEL_OK")
</pallas_src>

<mosaic_0001>
module attributes {stable_mosaic.version = 11 : i64} {
  func.func @_fused_kernel(%arg0: i32, %arg1: memref<2x128xf32, #tpu.memory_space<vmem>>, %arg2: memref<128x128xbf16, #tpu.memory_space<vmem>>, %arg3: memref<128x128xbf16, #tpu.memory_space<vmem>>, %arg4: memref<2x128xf32, #tpu.memory_space<vmem>>) attributes {dimension_semantics = [#tpu.dimension_semantics<parallel>], iteration_bounds = array<i64: 1>, scalar_prefetch = 0 : i64, scratch_operands = 0 : i64, tpu.core_type = #tpu.core_type<tc>, window_params = [{transform_indices = @transform_0, window_bounds = array<i64: 2, 128>}, {pipeline_mode = #tpu.pipeline_mode<synchronous>, transform_indices = @transform_1, window_bounds = array<i64: 128, 128>}, {pipeline_mode = #tpu.pipeline_mode<synchronous>, transform_indices = @transform_2, window_bounds = array<i64: 128, 128>}, {transform_indices = @transform_3, window_bounds = array<i64: 2, 128>}]} {
    %c0 = arith.constant 0 : index
    %c0_0 = arith.constant 0 : index
    %0 = vector.load %arg1[%c0, %c0_0] : memref<2x128xf32, #tpu.memory_space<vmem>>, vector<2x128xf32>
    %1 = arith.truncf %0 : vector<2x128xf32> to vector<2x128xbf16>
    %2 = arith.extf %1 : vector<2x128xbf16> to vector<2x128xf32>
    %3 = arith.subf %0, %2 : vector<2x128xf32>
    %4 = arith.truncf %3 : vector<2x128xf32> to vector<2x128xbf16>
    %c0_1 = arith.constant 0 : index
    %c0_2 = arith.constant 0 : index
    %5 = vector.load %arg2[%c0_1, %c0_2] : memref<128x128xbf16, #tpu.memory_space<vmem>>, vector<128x128xbf16>
    %c0_3 = arith.constant 0 : index
    %c0_4 = arith.constant 0 : index
    %6 = vector.load %arg3[%c0_3, %c0_4] : memref<128x128xbf16, #tpu.memory_space<vmem>>, vector<128x128xbf16>
    %cst = arith.constant dense<0.000000e+00> : vector<2x128xf32>
    %7 = tpu.matmul %1, %5, %cst {dimension_numbers = #tpu.dot_dimension_numbers<[1], [0], [0], [1], [0, 0, 1, 1], [], []>} : vector<2x128xbf16>, vector<128x128xbf16>, vector<2x128xf32> -> vector<2x128xf32>
    %cst_5 = arith.constant dense<0.000000e+00> : vector<2x128xf32>
    %8 = tpu.matmul %4, %5, %cst_5 {dimension_numbers = #tpu.dot_dimension_numbers<[1], [0], [0], [1], [0, 0, 1, 1], [], []>} : vector<2x128xbf16>, vector<128x128xbf16>, vector<2x128xf32> -> vector<2x128xf32>
    %9 = arith.addf %7, %8 : vector<2x128xf32>
    %cst_6 = arith.constant dense<0.000000e+00> : vector<2x128xf32>
    %10 = tpu.matmul %1, %6, %cst_6 {dimension_numbers = #tpu.dot_dimension_numbers<[1], [0], [0], [1], [0, 0, 1, 1], [], []>} : vector<2x128xbf16>, vector<128x128xbf16>, vector<2x128xf32> -> vector<2x128xf32>
    %11 = arith.addf %9, %10 : vector<2x128xf32>
    %c0_7 = arith.constant 0 : index
    %c0_8 = arith.constant 0 : index
    %12 = vector.load %arg4[%c0_7, %c0_8] : memref<2x128xf32, #tpu.memory_space<vmem>>, vector<2x128xf32>
    tpu.vector_store %arg4[%c0_7, %c0_8], %11 {strides = array<i32>} : memref<2x128xf32, #tpu.memory_space<vmem>>, vector<2x128xf32>,
    return
  }
  func.func @transform_0(%arg0: i32) -> (i32, i32) {
    %c0_i32 = arith.constant 0 : i32
    %c0_i32_0 = arith.constant 0 : i32
    return %arg0, %c0_i32 : i32, i32
  }
  func.func @transform_1(%arg0: i32) -> (i32, i32) {
    %c0_i32 = arith.constant 0 : i32
    %c0_i32_0 = arith.constant 0 : i32
    %c0_i32_1 = arith.constant 0 : i32
    return %c0_i32, %c0_i32_0 : i32, i32
  }
  func.func @transform_2(%arg0: i32) -> (i32, i32) {
    %c0_i32 = arith.constant 0 : i32
    %c0_i32_0 = arith.constant 0 : i32
    %c0_i32_1 = arith.constant 0 : i32
    return %c0_i32, %c0_i32_0 : i32, i32
  }
  func.func @transform_3(%arg0: i32) -> (i32, i32) {
    %c0_i32 = arith.constant 0 : i32
    %c0_i32_0 = arith.constant 0 : i32
    return %arg0, %c0_i32 : i32, i32
  }
}

module attributes {stable_mosaic.version = 11 : i64} {
  func.func @_fused_kernel(%arg0: i32, %arg1: memref<2x128xf32, #tpu.memory_space<vmem>>, %arg2: memref<128x128xbf16, #tpu.memory_space<vmem>>, %arg3: memref<128x128xbf16, #tpu.memory_space<vmem>>, %arg4: memref<2x128xf32, #tpu.memory_space<vmem>>) attributes {dimension_semantics = [#tpu.dimension_semantics<parallel>], iteration_bounds = array<i64: 1>, scalar_prefetch = 0 : i64, scratch_operands = 0 : i64, tpu.core_type = #tpu.core_type<tc>, window_params = [{transform_indices = @transform_0, window_bounds = array<i64: 2, 128>}, {pipeline_mode = #tpu.pipeline_mode<synchronous>, transform_indices = @transform_1, window_bounds = array<i64: 128, 128>}, {pipeline_mode = #tpu.pipeline_mode<synchronous>, transform_indices = @transform_2, window_bounds = array<i64: 128, 128>}, {transform_indices = @transform_3, window_bounds = array<i64: 2, 128>}]} {
    %c0 = arith.constant 0 : index
    %c0_0 = arith.constant 0 : index
    %0 = vector.load %arg1[%c0, %c0_0] : memref<2x128xf32, #tpu.memory_space<vmem>>, vector<2x128xf32>
    %1 = arith.truncf %0 : vector<2x128xf32> to vector<2x128xbf16>
    %2 = arith.extf %1 : vector<2x128xbf16> to vector<2x128xf32>
    %3 = arith.subf %0, %2 : vector<2x128xf32>
    %4 = arith.truncf %3 : vector<2x128xf32> to vector<2x128xbf16>
    %c0_1 = arith.constant 0 : index
    %c0_2 = arith.constant 0 : index
    %5 = vector.load %arg2[%c0_1, %c0_2] : memref<128x128xbf16, #tpu.memory_space<vmem>>, vector<128x128xbf16>
    %c0_3 = arith.constant 0 : index
    %c0_4 = arith.constant 0 : index
    %6 = vector.load %arg3[%c0_3, %c0_4] : memref<128x128xbf16, #tpu.memory_space<vmem>>, vector<128x128xbf16>
    %cst = arith.constant dense<0.000000e+00> : vector<2x128xf32>
    %7 = tpu.matmul %1, %5, %cst {dimension_numbers = #tpu.dot_dimension_numbers<[1], [0], [0], [1], [0, 0, 1, 1], [], []>} : vector<2x128xbf16>, vector<128x128xbf16>, vector<2x128xf32> -> vector<2x128xf32>
    %cst_5 = arith.constant dense<0.000000e+00> : vector<2x128xf32>
    %8 = tpu.matmul %4, %5, %cst_5 {dimension_numbers = #tpu.dot_dimension_numbers<[1], [0], [0], [1], [0, 0, 1, 1], [], []>} : vector<2x128xbf16>, vector<128x128xbf16>, vector<2x128xf32> -> vector<2x128xf32>
    %9 = arith.addf %7, %8 : vector<2x128xf32>
    %cst_6 = arith.constant dense<0.000000e+00> : vector<2x128xf32>
    %10 = tpu.matmul %1, %6, %cst_6 {dimension_numbers = #tpu.dot_dimension_numbers<[1], [0], [0], [1], [0, 0, 1, 1], [], []>} : vector<2x128xbf16>, vector<128x128xbf16>, vector<2x128xf32> -> vector<2x128xf32>
    %11 = arith.addf %9, %10 : vector<2x128xf32>
    %c0_7 = arith.constant 0 : index
    %c0_8 = arith.constant 0 : index
    %12 = vector.load %arg4[%c0_7, %c0_8] : memref<2x128xf32, #tpu.memory_space<vmem>>, vector<2x128xf32>
    tpu.vector_store %arg4[%c0_7, %c0_8], %11 {strides = array<i32>} : memref<2x128xf32, #tpu.memory_space<vmem>>, vector<2x128xf32>,
    return
  }
  func.func @transform_0(%arg0: i32) -> (i32, i32) {
    %c0_i32 = arith.constant 0 : i32
    %c0_i32_0 = arith.constant 0 : i32
    return %arg0, %c0_i32 : i32, i32
  }
  func.func @transform_1(%arg0: i32) -> (i32, i32) {
    %c0_i32 = arith.constant 0 : i32
    %c0_i32_0 = arith.constant 0 : i32
    %c0_i32_1 = arith.constant 0 : i32
    return %c0_i32, %c0_i32_0 : i32, i32
  }
  func.func @transform_2(%arg0: i32) -> (i32, i32) {
    %c0_i32 = arith.constant 0 : i32
    %c0_i32_0 = arith.constant 0 : i32
    %c0_i32_1 = arith.constant 0 : i32
    return %c0_i32, %c0_i32_0 : i32, i32
  }
  func.func @transform_3(%arg0: i32) -> (i32, i32) {
    %c0_i32 = arith.constant 0 : i32
    %c0_i32_0 = arith.constant 0 : i32
    return %arg0, %c0_i32 : i32, i32
  }
}

</mosaic_0001>

<bundles_post_ra>
// kernel: tpu_custom_call.1
= control target key start
LH: loop header
LB: loop body
LE: loop exit
PB: predicated region body
PF: predicated region fallthrough
CT: control target
= control target key end

     0   :  { %8 = vsyncpa [#allocation3], 0  ;;  %s609_s0 = inlined_call_operand.hbm [shape: f32[2,128], index: 0, kind: input, shape index: {}]   ;;  %s610_s1 = inlined_call_operand.hbm [shape: bf16[128,128], index: 1, kind: input, shape index: {}]   ;;  %s611_s2 = inlined_call_operand.hbm [shape: bf16[128,128], index: 2, kind: input, shape index: {}]   ;;  %s612_s3 = inlined_call_operand.hbm [shape: f32[2,128], index: 3, kind: output, shape index: {}]  }
   0x1   :  { %9 = vsyncpa [#allocation6], 0 }
   0x2   :  { %10 = vsyncpa [#allocation4], 0  ;;  %s539_s12 = smov [#allocation5]  }
   0x3   :  { %s26_s13 = sshll.u32 %s539_s12, 4  ;;  %s27_s13 = int_to_ptr.vmem [resolvable:$true] %s26_s13 }
   0x4   :  { %s461_s14 = scalar_lea.vmem %s27_s13, 1024  ;;  %p466_p1 = scmp.lt.s32.totalorder %s27_s13, %s27_s13 }
   0x5   :  { %p462_p0 = scmp.ne.s32.totalorder %s27_s13, %s461_s14  ;;  %p467_p2 = scmp.lt.s32.totalorder %s461_s14, %s461_s14 }
   0x7   :  { %p468_p3 = por %p467_p2, %p466_p1 }
   0x9   :  { %p469_p4 = pnand %p468_p3, %p462_p0 }
   0xb   :  { %472 = shalt.err (!%p469_p4)
}
   0xc   :  { %s540_s15 = smov 64   ;;  %s541_s16 = smov 4  }
   0xd   :  { %32 = dma.hbm_to_vmem [thread:$0]  %s610_s1, 1024, %s27_s13, [#allocation6], %s540_s15, %s540_s15, %s541_s16  }
   0xe   :  { %s542_s19 = smov [#allocation2]   ;;  %s543_s21 = smov [#allocation7]  }
   0xf   :  { %s17_s20 = sshll.u32 %s542_s19, 4  ;;  %s38_s22 = sshll.u32 %s543_s21, 4  ;;  %s18_s20 = int_to_ptr.vmem [resolvable:$true] %s17_s20  ;;  %s39_s22 = int_to_ptr.vmem [resolvable:$true] %s38_s22 }
  0x10   :  { %s481_s23 = scalar_lea.vmem %s18_s20, 32  ;;  %p486_p6 = scmp.lt.s32.totalorder %s18_s20, %s18_s20 }
  0x11   :  { %p482_p5 = scmp.ne.s32.totalorder %s18_s20, %s481_s23  ;;  %p487_p7 = scmp.lt.s32.totalorder %s481_s23, %s481_s23 }
  0x13   :  { %p488_p8 = por %p487_p7, %p486_p6 }
  0x15   :  { %p489_p9 = pnand %p488_p8, %p482_p5 }
  0x17   :  { %492 = shalt.err (!%p489_p9)
}
  0x18   :  { %20 = dma.hbm_to_vmem [thread:$0]  %s609_s0, 32, %s18_s20, [#allocation3]  }
  0x19   :  { %s501_s26 = scalar_lea.vmem %s39_s22, 1024  ;;  %p506_p11 = scmp.lt.s32.totalorder %s39_s22, %s39_s22 }
  0x1a   :  { %p502_p10 = scmp.ne.s32.totalorder %s39_s22, %s501_s26  ;;  %p507_p12 = scmp.lt.s32.totalorder %s501_s26, %s501_s26 }
  0x1c   :  { %p508_p13 = por %p507_p12, %p506_p11 }
  0x1e   :  { %p509_p0 = pnand %p508_p13, %p502_p10 }
  0x20   :  { %512 = shalt.err (!%p509_p0)
}
  0x21   :  { %44 = dma.hbm_to_vmem [thread:$0]  %s611_s2, 1024, %s39_s22, [#allocation6], %s540_s15, %s540_s15, %s541_s16  }
  0x22   :  { %533 = dma.done.wait [#allocation3], 32  }
  0x23   :  { %534 = vsyncadd [#allocation3], 4294967264 }
  0x24   :  { %535 = dma.done.wait [#allocation6], 2048  }
  0x25   :  { %536 = vsyncadd [#allocation6], 4294965248  ;;  %v544_v0 = vmov 0.0   ;;  %vm545_vm0 = vmmov 0   ;;  %v437_v1 = vld [vmem:[#allocation5 + $0x38] sm:$0xff]   ;;  %v438_v2 = vld [vmem:[#allocation5 + $0x30] sm:$0xff]  }
  0x26   :  { %369 = vmatprep.subr.bf16.mxu0 %v544_v0  ;;  %389 = vmatprep.subr.bf16.mxu1 %v544_v0  ;;  %v439_v3 = vld [vmem:[#allocation5 + $0x28] sm:$0xff]   ;;  %v440_v4 = vld [vmem:[#allocation5 + $0x20] sm:$0xff]   ;;  %v441_v5 = vld [vmem:[#allocation5 + $0x18] sm:$0xff]   ;;  %s546_s0 = smov [#allocation8]  }
  0x27   :  { %385 = vmatprep.mubr.msk.bf16.mxu0 %vm545_vm0, %v544_v0  ;;  %405 = vmatprep.mubr.msk.bf16.mxu1 %vm545_vm0, %v544_v0  ;;  %v55_v6 = vld [vmem:[#allocation2] sm:$0x3]  ;;  %v442_v8 = vld [vmem:[#allocation5 + $0x10] sm:$0xff]   ;;  %v443_v10 = vld [vmem:[#allocation5 + $0x8] sm:$0xff]   ;;  %s316_s2 = sshll.u32 %s546_s0, 4  ;;  %s317_s2 = int_to_ptr.vmem [resolvable:$true] %s316_s2 }
  0x28   :  { %370 = vmatpush3.bf16.msra.mxu0 %v437_v1  ;;  %390 = vmatpush3.bf16.msra.mxu1 %v437_v1  ;;  %v56_v7 = vpack.c.bf16 %v55_v6, %v55_v6  ;;  %v444_v12 = vld [vmem:[#allocation5] sm:$0xff]   ;;  %v445_v14 = vld [vmem:[#allocation7 + $0x38] sm:$0xff]   ;;  %v446_v15 = vld [vmem:[#allocation7 + $0x30] sm:$0xff]   ;;  %s513_s28 = scalar_lea.vmem %s317_s2, 32  ;;  %p518_p2 = scmp.lt.s32.totalorder %s317_s2, %s317_s2 }
  0x29   :  { %371 = vmatprep.subr.bf16.mxu0 %v544_v0  ;;  %391 = vmatprep.subr.bf16.mxu1 %v544_v0  ;;  %v447_v16 = vld [vmem:[#allocation7 + $0x28] sm:$0xff]   ;;  %v448_v17 = vld [vmem:[#allocation7 + $0x20] sm:$0xff]   ;;  %v449_v18 = vld [vmem:[#allocation7 + $0x18] sm:$0xff]   ;;  %p514_p1 = scmp.ne.s32.totalorder %s317_s2, %s513_s28  ;;  %p519_p3 = scmp.lt.s32.totalorder %s513_s28, %s513_s28 }
  0x2a   :  { %v57_v9 = vunpack.c.l.bf16 %v56_v7  ;;  %v450_v19 = vld [vmem:[#allocation7 + $0x10] sm:$0xff]   ;;  %v451_v20 = vld [vmem:[#allocation7 + $0x8] sm:$0xff]   ;;  %v452_v21 = vld [vmem:[#allocation7] sm:$0xff]  }
  0x2b   :  { %p520_p4 = por %p519_p3, %p518_p2 }
  0x2c   :  { %372 = vmatpush3.bf16.msra.mxu0 %v438_v2  ;;  %392 = vmatpush3.bf16.msra.mxu1 %v438_v2  ;;  %v58_v11 = vsub.f32 %v55_v6, %v57_v9 }
  0x2d   :  { %373 = vmatprep.subr.bf16.mxu0 %v544_v0  ;;  %393 = vmatprep.subr.bf16.mxu1 %v544_v0  ;;  %p521_p5 = pnand %p520_p4, %p514_p1 }
  0x2e   :  { %v59_v13 = vpack.c.bf16 %v58_v11, %v58_v11 }
  0x30   :  { %374 = vmatpush3.bf16.msra.mxu0 %v439_v3  ;;  %394 = vmatpush3.bf16.msra.mxu1 %v439_v3 }
  0x31   :  { %375 = vmatprep.subr.bf16.mxu0 %v544_v0  ;;  %395 = vmatprep.subr.bf16.mxu1 %v544_v0 }
  0x34   :  { %376 = vmatpush3.bf16.msra.mxu0 %v440_v4  ;;  %396 = vmatpush3.bf16.msra.mxu1 %v440_v4 }
  0x35   :  { %377 = vmatprep.subr.bf16.mxu0 %v544_v0  ;;  %397 = vmatprep.subr.bf16.mxu1 %v544_v0 }
  0x38   :  { %378 = vmatpush3.bf16.msra.mxu0 %v441_v5  ;;  %398 = vmatpush3.bf16.msra.mxu1 %v441_v5 }
  0x39   :  { %379 = vmatprep.subr.bf16.mxu0 %v544_v0  ;;  %399 = vmatprep.subr.bf16.mxu1 %v544_v0 }
  0x3c   :  { %380 = vmatpush3.bf16.msra.mxu0 %v442_v8  ;;  %400 = vmatpush3.bf16.msra.mxu1 %v442_v8 }
  0x3d   :  { %381 = vmatprep.subr.bf16.mxu0 %v544_v0  ;;  %401 = vmatprep.subr.bf16.mxu1 %v544_v0 }
  0x40   :  { %382 = vmatpush3.bf16.msra.mxu0 %v443_v10  ;;  %402 = vmatpush3.bf16.msra.mxu1 %v443_v10 }
  0x41   :  { %383 = vmatprep.subr.bf16.mxu0 %v544_v0  ;;  %403 = vmatprep.subr.bf16.mxu1 %v544_v0 }
  0x44   :  { %384 = vmatpush3.bf16.msra.mxu0 %v444_v12  ;;  %404 = vmatpush3.bf16.msra.mxu1 %v444_v12 }
  0x45   :  { %409 = vmatprep.subr.bf16.mxu0 %v544_v0 }
  0x47   :  { %386 = vmatmul.mubr.bf16.vlgmr.msra.gmra.mxu0 %v59_v13  ;;  %406 = vmatmul.mubr.bf16.vlgmr.msra.gmra.mxu1 %v56_v7 }
  0x48   :  { %410 = vmatpush3.bf16.msra.mxu0 %v445_v14  ;;  %425 = vmatprep.mubr.msk.bf16.mxu0 %vm545_vm0, %v544_v0 }
  0x49   :  { %411 = vmatprep.subr.bf16.mxu0 %v544_v0 }
  0x4c   :  { %412 = vmatpush3.bf16.msra.mxu0 %v446_v15 }
  0x4d   :  { %413 = vmatprep.subr.bf16.mxu0 %v544_v0 }
  0x50   :  { %414 = vmatpush3.bf16.msra.mxu0 %v447_v16 }
  0x51   :  { %415 = vmatprep.subr.bf16.mxu0 %v544_v0 }
  0x54   :  { %416 = vmatpush3.bf16.msra.mxu0 %v448_v17 }
  0x55   :  { %417 = vmatprep.subr.bf16.mxu0 %v544_v0 }
  0x58   :  { %418 = vmatpush3.bf16.msra.mxu0 %v449_v18 }
  0x59   :  { %419 = vmatprep.subr.bf16.mxu0 %v544_v0 }
  0x5c   :  { %420 = vmatpush3.bf16.msra.mxu0 %v450_v19 }
  0x5d   :  { %421 = vmatprep.subr.bf16.mxu0 %v544_v0 }
  0x60   :  { %422 = vmatpush3.bf16.msra.mxu0 %v451_v20 }
  0x61   :  { %423 = vmatprep.subr.bf16.mxu0 %v544_v0 }
  0x64   :  { %424 = vmatpush3.bf16.msra.mxu0 %v452_v21 }
  0x67   :  { %426 = vmatmul.mubr.bf16.vlgmr.msra.gmra.mxu0 %v56_v7 }
 0x107   :  { %v174_v22 = vpop.f32.mrf.mxu0  ;;  %v214_v23 = vpop.f32.mrf.mxu1 }
 0x108   :  { %v215_v30 = vadd.f32 %v214_v23, %v174_v22 }
 0x109   :  { %v387_v24 = vpop.f32.mrf.mxu0  ;;  %v407_v25 = vpop.f32.mrf.mxu1 }
 0x10b   :  { %v177_v26 = vpop.f32.mrf.mxu0  ;;  %v217_v27 = vpop.f32.mrf.mxu1 }
 0x10d   :  { %v388_v28 = vpop.f32.mrf.mxu0  ;;  %v408_v29 = vpop.f32.mrf.mxu1 }
 0x127   :  { %v302_v31 = vpop.f32.mrf.mxu0 }
 0x128   :  { %v308_v32 = vadd.f32 %v302_v31, %v215_v30 }
 0x129   :  { %v427_v33 = vpop.f32.mrf.mxu0 }
 0x12a   :  { %309 = vst [vmem:[#allocation8] sm:$0x3] %v308_v32 }
 0x12b   :  { %v305_v34 = vpop.f32.mrf.mxu0 }
 0x12c   :  { %524 = shalt.err (!%p521_p5)
}
 0x12d   :  { %319 = dma.vmem_to_hbm [thread:$0]  %s317_s2, 32, %s612_s3, [#allocation4]   ;;  %v428_v35 = vpop.f32.mrf.mxu0 }
 0x12e   :  { %537 = dma.done.wait [#allocation4], 32  }
 0x12f   :  { %538 = vsyncadd [#allocation4], 4294967264 }
 0x130   :  { %323 = vsyncpa [#allocation3], 1 }
 0x131   :  { %324 = vsyncpa [#allocation6], 1 }
 0x132   :  { %325 = vsyncpa [#allocation4], 1 }

// kernel: tpu_custom_call.1
= control target key start
LH: loop header
LB: loop body
LE: loop exit
PB: predicated region body
PF: predicated region fallthrough
CT: control target
= control target key end

     0   :  { %8 = vsyncpa [#allocation3], 0  ;;  %s609_s0 = inlined_call_operand.hbm [shape: f32[2,128], index: 0, kind: input, shape index: {}]   ;;  %s610_s1 = inlined_call_operand.hbm [shape: bf16[128,128], index: 1, kind: input, shape index: {}]   ;;  %s611_s2 = inlined_call_operand.hbm [shape: bf16[128,128], index: 2, kind: input, shape index: {}]   ;;  %s612_s3 = inlined_call_operand.hbm [shape: f32[2,128], index: 3, kind: output, shape index: {}]  }
   0x1   :  { %9 = vsyncpa [#allocation6], 0 }
   0x2   :  { %10 = vsyncpa [#allocation4], 0  ;;  %s539_s12 = smov [#allocation5]  }
   0x3   :  { %s26_s13 = sshll.u32 %s539_s12, 4  ;;  %s27_s13 = int_to_ptr.vmem [resolvable:$true] %s26_s13 }
   0x4   :  { %s461_s14 = scalar_lea.vmem %s27_s13, 1024  ;;  %p466_p1 = scmp.lt.s32.totalorder %s27_s13, %s27_s13 }
   0x5   :  { %p462_p0 = scmp.ne.s32.totalorder %s27_s13, %s461_s14  ;;  %p467_p2 = scmp.lt.s32.totalorder %s461_s14, %s461_s14 }
   0x7   :  { %p468_p3 = por %p467_p2, %p466_p1 }
   0x9   :  { %p469_p4 = pnand %p468_p3, %p462_p0 }
   0xb   :  { %472 = shalt.err (!%p469_p4)
}
   0xc   :  { %s540_s15 = smov 64   ;;  %s541_s16 = smov 4  }
   0xd   :  { %32 = dma.hbm_to_vmem [thread:$0]  %s610_s1, 1024, %s27_s13, [#allocation6], %s540_s15, %s540_s15, %s541_s16  }
   0xe   :  { %s542_s19 = smov [#allocation2]   ;;  %s543_s21 = smov [#allocation7]  }
   0xf   :  { %s17_s20 = sshll.u32 %s542_s19, 4  ;;  %s38_s22 = sshll.u32 %s543_s21, 4  ;;  %s18_s20 = int_to_ptr.vmem [resolvable:$true] %s17_s20  ;;  %s39_s22 = int_to_ptr.vmem [resolvable:$true] %s38_s22 }
  0x10   :  { %s481_s23 = scalar_lea.vmem %s18_s20, 32  ;;  %p486_p6 = scmp.lt.s32.totalorder %s18_s20, %s18_s20 }
  0x11   :  { %p482_p5 = scmp.ne.s32.totalorder %s18_s20, %s481_s23  ;;  %p487_p7 = scmp.lt.s32.totalorder %s481_s23, %s481_s23 }
  0x13   :  { %p488_p8 = por %p487_p7, %p486_p6 }
  0x15   :  { %p489_p9 = pnand %p488_p8, %p482_p5 }
  0x17   :  { %492 = shalt.err (!%p489_p9)
}
  0x18   :  { %20 = dma.hbm_to_vmem [thread:$0]  %s609_s0, 32, %s18_s20, [#allocation3]  }
  0x19   :  { %s501_s26 = scalar_lea.vmem %s39_s22, 1024  ;;  %p506_p11 = scmp.lt.s32.totalorder %s39_s22, %s39_s22 }
  0x1a   :  { %p502_p10 = scmp.ne.s32.totalorder %s39_s22, %s501_s26  ;;  %p507_p12 = scmp.lt.s32.totalorder %s501_s26, %s501_s26 }
  0x1c   :  { %p508_p13 = por %p507_p12, %p506_p11 }
  0x1e   :  { %p509_p0 = pnand %p508_p13, %p502_p10 }
  0x20   :  { %512 = shalt.err (!%p509_p0)
}
  0x21   :  { %44 = dma.hbm_to_vmem [thread:$0]  %s611_s2, 1024, %s39_s22, [#allocation6], %s540_s15, %s540_s15, %s541_s16  }
  0x22   :  { %533 = dma.done.wait [#allocation3], 32  }
  0x23   :  { %534 = vsyncadd [#allocation3], 4294967264 }
  0x24   :  { %535 = dma.done.wait [#allocation6], 2048  }
  0x25   :  { %536 = vsyncadd [#allocation6], 4294965248  ;;  %v544_v0 = vmov 0.0   ;;  %vm545_vm0 = vmmov 0   ;;  %v437_v1 = vld [vmem:[#allocation5 + $0x38] sm:$0xff]   ;;  %v438_v2 = vld [vmem:[#allocation5 + $0x30] sm:$0xff]  }
  0x26   :  { %369 = vmatprep.subr.bf16.mxu0 %v544_v0  ;;  %389 = vmatprep.subr.bf16.mxu1 %v544_v0  ;;  %v439_v3 = vld [vmem:[#allocation5 + $0x28] sm:$0xff]   ;;  %v440_v4 = vld [vmem:[#allocation5 + $0x20] sm:$0xff]   ;;  %v441_v5 = vld [vmem:[#allocation5 + $0x18] sm:$0xff]   ;;  %s546_s0 = smov [#allocation8]  }
  0x27   :  { %385 = vmatprep.mubr.msk.bf16.mxu0 %vm545_vm0, %v544_v0  ;;  %405 = vmatprep.mubr.msk.bf16.mxu1 %vm545_vm0, %v544_v0  ;;  %v55_v6 = vld [vmem:[#allocation2] sm:$0x3]  ;;  %v442_v8 = vld [vmem:[#allocation5 + $0x10] sm:$0xff]   ;;  %v443_v10 = vld [vmem:[#allocation5 + $0x8] sm:$0xff]   ;;  %s316_s2 = sshll.u32 %s546_s0, 4  ;;  %s317_s2 = int_to_ptr.vmem [resolvable:$true] %s316_s2 }
  0x28   :  { %370 = vmatpush3.bf16.msra.mxu0 %v437_v1  ;;  %390 = vmatpush3.bf16.msra.mxu1 %v437_v1  ;;  %v56_v7 = vpack.c.bf16 %v55_v6, %v55_v6  ;;  %v444_v12 = vld [vmem:[#allocation5] sm:$0xff]   ;;  %v445_v14 = vld [vmem:[#allocation7 + $0x38] sm:$0xff]   ;;  %v446_v15 = vld [vmem:[#allocation7 + $0x30] sm:$0xff]   ;;  %s513_s28 = scalar_lea.vmem %s317_s2, 32  ;;  %p518_p2 = scmp.lt.s32.totalorder %s317_s2, %s317_s2 }
  0x29   :  { %371 = vmatprep.subr.bf16.mxu0 %v544_v0  ;;  %391 = vmatprep.subr.bf16.mxu1 %v544_v0  ;;  %v447_v16 = vld [vmem:[#allocation7 + $0x28] sm:$0xff]   ;;  %v448_v17 = vld [vmem:[#allocation7 + $0x20] sm:$0xff]   ;;  %v449_v18 = vld [vmem:[#allocation7 + $0x18] sm:$0xff]   ;;  %p514_p1 = scmp.ne.s32.totalorder %s317_s2, %s513_s28  ;;  %p519_p3 = scmp.lt.s32.totalorder %s513_s28, %s513_s28 }
  0x2a   :  { %v57_v9 = vunpack.c.l.bf16 %v56_v7  ;;  %v450_v19 = vld [vmem:[#allocation7 + $0x10] sm:$0xff]   ;;  %v451_v20 = vld [vmem:[#allocation7 + $0x8] sm:$0xff]   ;;  %v452_v21 = vld [vmem:[#allocation7] sm:$0xff]  }
  0x2b   :  { %p520_p4 = por %p519_p3, %p518_p2 }
  0x2c   :  { %372 = vmatpush3.bf16.msra.mxu0 %v438_v2  ;;  %392 = vmatpush3.bf16.msra.mxu1 %v438_v2  ;;  %v58_v11 = vsub.f32 %v55_v6, %v57_v9 }
  0x2d   :  { %373 = vmatprep.subr.bf16.mxu0 %v544_v0  ;;  %393 = vmatprep.subr.bf16.mxu1 %v544_v0  ;;  %p521_p5 = pnand %p520_p4, %p514_p1 }
  0x2e   :  { %v59_v13 = vpack.c.bf16 %v58_v11, %v58_v11 }
  0x30   :  { %374 = vmatpush3.bf16.msra.mxu0 %v439_v3  ;;  %394 = vmatpush3.bf16.msra.mxu1 %v439_v3 }
  0x31   :  { %375 = vmatprep.subr.bf16.mxu0 %v544_v0  ;;  %395 = vmatprep.subr.bf16.mxu1 %v544_v0 }
  0x34   :  { %376 = vmatpush3.bf16.msra.mxu0 %v440_v4  ;;  %396 = vmatpush3.bf16.msra.mxu1 %v440_v4 }
  0x35   :  { %377 = vmatprep.subr.bf16.mxu0 %v544_v0  ;;  %397 = vmatprep.subr.bf16.mxu1 %v544_v0 }
  0x38   :  { %378 = vmatpush3.bf16.msra.mxu0 %v441_v5  ;;  %398 = vmatpush3.bf16.msra.mxu1 %v441_v5 }
  0x39   :  { %379 = vmatprep.subr.bf16.mxu0 %v544_v0  ;;  %399 = vmatprep.subr.bf16.mxu1 %v544_v0 }
  0x3c   :  { %380 = vmatpush3.bf16.msra.mxu0 %v442_v8  ;;  %400 = vmatpush3.bf16.msra.mxu1 %v442_v8 }
  0x3d   :  { %381 = vmatprep.subr.bf16.mxu0 %v544_v0  ;;  %401 = vmatprep.subr.bf16.mxu1 %v544_v0 }
  0x40   :  { %382 = vmatpush3.bf16.msra.mxu0 %v443_v10  ;;  %402 = vmatpush3.bf16.msra.mxu1 %v443_v10 }
  0x41   :  { %383 = vmatprep.subr.bf16.mxu0 %v544_v0  ;;  %403 = vmatprep.subr.bf16.mxu1 %v544_v0 }
  0x44   :  { %384 = vmatpush3.bf16.msra.mxu0 %v444_v12  ;;  %404 = vmatpush3.bf16.msra.mxu1 %v444_v12 }
  0x45   :  { %409 = vmatprep.subr.bf16.mxu0 %v544_v0 }
  0x47   :  { %386 = vmatmul.mubr.bf16.vlgmr.msra.gmra.mxu0 %v59_v13  ;;  %406 = vmatmul.mubr.bf16.vlgmr.msra.gmra.mxu1 %v56_v7 }
  0x48   :  { %410 = vmatpush3.bf16.msra.mxu0 %v445_v14  ;;  %425 = vmatprep.mubr.msk.bf16.mxu0 %vm545_vm0, %v544_v0 }
  0x49   :  { %411 = vmatprep.subr.bf16.mxu0 %v544_v0 }
  0x4c   :  { %412 = vmatpush3.bf16.msra.mxu0 %v446_v15 }
  0x4d   :  { %413 = vmatprep.subr.bf16.mxu0 %v544_v0 }
  0x50   :  { %414 = vmatpush3.bf16.msra.mxu0 %v447_v16 }
  0x51   :  { %415 = vmatprep.subr.bf16.mxu0 %v544_v0 }
  0x54   :  { %416 = vmatpush3.bf16.msra.mxu0 %v448_v17 }
  0x55   :  { %417 = vmatprep.subr.bf16.mxu0 %v544_v0 }
  0x58   :  { %418 = vmatpush3.bf16.msra.mxu0 %v449_v18 }
  0x59   :  { %419 = vmatprep.subr.bf16.mxu0 %v544_v0 }
  0x5c   :  { %420 = vmatpush3.bf16.msra.mxu0 %v450_v19 }
  0x5d   :  { %421 = vmatprep.subr.bf16.mxu0 %v544_v0 }
  0x60   :  { %422 = vmatpush3.bf16.msra.mxu0 %v451_v20 }
  0x61   :  { %423 = vmatprep.subr.bf16.mxu0 %v544_v0 }
  0x64   :  { %424 = vmatpush3.bf16.msra.mxu0 %v452_v21 }
  0x67   :  { %426 = vmatmul.mubr.bf16.vlgmr.msra.gmra.mxu0 %v56_v7 }
 0x107   :  { %v174_v22 = vpop.f32.mrf.mxu0  ;;  %v214_v23 = vpop.f32.mrf.mxu1 }
 0x108   :  { %v215_v30 = vadd.f32 %v214_v23, %v174_v22 }
 0x109   :  { %v387_v24 = vpop.f32.mrf.mxu0  ;;  %v407_v25 = vpop.f32.mrf.mxu1 }
 0x10b   :  { %v177_v26 = vpop.f32.mrf.mxu0  ;;  %v217_v27 = vpop.f32.mrf.mxu1 }
 0x10d   :  { %v388_v28 = vpop.f32.mrf.mxu0  ;;  %v408_v29 = vpop.f32.mrf.mxu1 }
 0x127   :  { %v302_v31 = vpop.f32.mrf.mxu0 }
 0x128   :  { %v308_v32 = vadd.f32 %v302_v31, %v215_v30 }
 0x129   :  { %v427_v33 = vpop.f32.mrf.mxu0 }
 0x12a   :  { %309 = vst [vmem:[#allocation8] sm:$0x3] %v308_v32 }
 0x12b   :  { %v305_v34 = vpop.f32.mrf.mxu0 }
 0x12c   :  { %524 = shalt.err (!%p521_p5)
}
 0x12d   :  { %319 = dma.vmem_to_hbm [thread:$0]  %s317_s2, 32, %s612_s3, [#allocation4]   ;;  %v428_v35 = vpop.f32.mrf.mxu0 }
 0x12e   :  { %537 = dma.done.wait [#allocation4], 32  }
 0x12f   :  { %538 = vsyncadd [#allocation4], 4294967264 }
 0x130   :  { %323 = vsyncpa [#allocation3], 1 }
 0x131   :  { %324 = vsyncpa [#allocation6], 1 }
 0x132   :  { %325 = vsyncpa [#allocation4], 1 }

</bundles_post_ra>
